<compile_context>
chip_gen: v5e
topology: v5e:2x2
jax: 0.10.0
libtpu: 0.0.40
codegen_flags: <defaults>
</compile_context>

<pallas_src>
import functools

import jax
import jax.numpy as jnp
from jax.experimental import pallas as pl
from jax.experimental.pallas import tpu as pltpu


# ----------------------------------------------------------------------------
# Pallas kernel: fused  conv (one matmul per image)  ->  batch-norm  ->  ReLU
# ----------------------------------------------------------------------------
def _conv_bn_relu_kernel(x_ref, w_ref, gb_ref, o_ref, *, eps, inv_count):
    # x_ref : (N, K, HW)     full-im2col input, transposed: spatial rows on lanes
    # w_ref : (Cout, K)      conv weight (OIHW flattened), Cout on sublanes
    # gb_ref: (Cout, 2)      column 0 = gamma, column 1 = beta
    # o_ref : (N, Cout, HW)  NCHW-native, lane-dense output (f32)
    n_batch = o_ref.shape[0]
    cout = o_ref.shape[1]

    s = jnp.zeros((cout, 1), jnp.float32)
    ss = jnp.zeros((cout, 1), jnp.float32)

    # --- convolution: one MXU matmul per image, K reduction inside the MXU ---
    for n in range(n_batch):                        # static unroll (N tiny)
        y = jnp.dot(w_ref[...], x_ref[n],
                    preferred_element_type=jnp.float32)
        o_ref[n, :, :] = y                          # stash pre-BN result in place
        # one-pass batch-norm statistics (per-channel over lanes + batch)
        s = s + jnp.sum(y, axis=1, keepdims=True)
        ss = ss + jnp.sum(y * y, axis=1, keepdims=True)

    # --- BatchNorm2d (training mode, biased variance) folded to one FMA ---
    mean = s * inv_count
    var = jnp.maximum(ss * inv_count - mean * mean, 0.0)   # clamp cancellation
    scale = gb_ref[:, 0:1] * jax.lax.rsqrt(var + eps)       # gamma / sqrt(var+eps)
    shift = gb_ref[:, 1:2] - mean * scale                   # beta - mean * scale

    # --- fused scale/shift + ReLU epilogue, in-place, lane-dense stores ---
    for n in range(n_batch):
        o_ref[n, :, :] = jnp.maximum(o_ref[n, :, :] * scale + shift,
                                     0.0).astype(o_ref.dtype)


# ----------------------------------------------------------------------------
# Wrapper: pad, full im2col (channels-first K order), Pallas call, free reshape.
# ----------------------------------------------------------------------------
def conv2d_batch_normalized(x_nchw, weight_oihw, gamma, beta, *, eps=1e-5):
    N, Cin, H, W = x_nchw.shape
    Cout, Cin_w, KH, KW = weight_oihw.shape
    assert Cin == Cin_w
    # PyTorch 'same' padding with stride=1 and odd kernels -> symmetric pad.
    assert KH % 2 == 1 and KW % 2 == 1, "'same' padding with stride=1 needs odd kernels"
    # Pre-BN conv result is stashed in o_ref, so the output must be f32.
    # TODO(synk): add an f32 VMEM scratch path if a bf16 output is ever needed.
    assert x_nchw.dtype == jnp.float32

    ph, pw = (KH - 1) // 2, (KW - 1) // 2
    HW = H * W                      # 256 here: multiple of 128 -> lane-dense stores
    K = Cin * KH * KW               # contraction depth (36 here)

    # Full im2col, K ordered (cin, kh, kw) to match the OIHW weight flatten.
    #   x2[n, cin*KH*KW + kh*KW + kw, h*W + w] = xp[n, cin, h + kh, w + kw]
    xp = jnp.pad(x_nchw, ((0, 0), (0, 0), (ph, ph), (pw, pw)))
    x2 = jnp.stack([xp[:, :, kh:kh + H, kw:kw + W]
                    for kh in range(KH) for kw in range(KW)],
                   axis=2).reshape(N, K, HW)

    w2 = weight_oihw.reshape(Cout, K)
    gb = jnp.stack([gamma, beta], axis=1).astype(jnp.float32)      # (Cout, 2)

    kernel = functools.partial(_conv_bn_relu_kernel, eps=eps,
                               inv_count=1.0 / (N * HW))

    cost = pl.CostEstimate(
        flops=2 * N * HW * K * Cout,
        transcendentals=Cout,
        bytes_accessed=4 * (x2.size + w2.size + gb.size + N * Cout * HW))

    # BN batch statistics need the whole batch in one invocation; the whole problem
    # (< 200 KiB incl. double-buffering) fits VMEM on v5e/v6e/v7x -> one full block.
    out_flat = pl.pallas_call(
        kernel,
        out_shape=jax.ShapeDtypeStruct((N, Cout, HW), x_nchw.dtype),
        grid=(1,),
        in_specs=[
            pl.BlockSpec((N, K, HW), lambda i: (0, 0, 0)),
            pl.BlockSpec((Cout, K), lambda i: (0, 0)),
            pl.BlockSpec((Cout, 2), lambda i: (0, 0)),
        ],
        out_specs=pl.BlockSpec((N, Cout, HW), lambda i: (0, 0, 0)),
        compiler_params=pltpu.CompilerParams(dimension_semantics=("arbitrary",)),
        cost_estimate=cost,
    )(x2, w2, gb)

    # (N, Cout, H*W) is already NCHW-native: only a free reshape remains.
    return out_flat.reshape(N, Cout, H, W)


# ----------------------------------------------------------------------------
# Pure-JAX reference (mirrors the PyTorch forward) for the correctness check.
# ----------------------------------------------------------------------------
def _reference(x_nchw, weight_oihw, gamma, beta, eps=1e-5):
    y = jax.lax.conv_general_dilated(
        x_nchw, weight_oihw, window_strides=(1, 1), padding="SAME",
        dimension_numbers=("NCHW", "OIHW", "NCHW"),
    )
    mean = y.mean(axis=(0, 2, 3), keepdims=True)
    var = ((y - mean) ** 2).mean(axis=(0, 2, 3), keepdims=True)
    y_hat = (y - mean) * jax.lax.rsqrt(var + eps)
    out = y_hat * gamma.reshape(1, -1, 1, 1) + beta.reshape(1, -1, 1, 1)
    return jnp.maximum(out, 0.0)


if __name__ == "__main__":
    key = jax.random.PRNGKey(0)
    k1, k2, k3, k4 = jax.random.split(key, 4)

    # Small shapes consistent with the module: NCHW input, Conv2d(4 -> 8, 3x3, 'same').
    N, Cin, H, W = 2, 4, 16, 16
    Cout, KH, KW = 8, 3, 3

    x = jax.random.normal(k1, (N, Cin, H, W), jnp.float32)
    weight = jax.random.normal(k2, (Cout, Cin, KH, KW), jnp.float32) / (Cin * KH * KW) ** 0.5
    gamma = 1.0 + 0.1 * jax.random.normal(k3, (Cout,), jnp.float32)   # BatchNorm2d.weight
    beta = 0.1 * jax.random.normal(k4, (Cout,), jnp.float32)          # BatchNorm2d.bias

    out = conv2d_batch_normalized(x, weight, gamma, beta)
    out = jax.block_until_ready(out)

    ref = _reference(x, weight, gamma, beta)
    assert out.shape == (N, Cout, H, W), out.shape
    max_err = float(jnp.max(jnp.abs(out - ref)))
    assert jnp.allclose(out, ref, atol=1e-4, rtol=1e-4), f"max abs err {max_err}"

    print("KERNEL_OK")
</pallas_src>

<mosaic_0001>
module attributes {stable_mosaic.version = 11 : i64} {
  func.func @_conv_bn_relu_kernel(%arg0: i32, %arg1: memref<2x36x256xf32, #tpu.memory_space<vmem>>, %arg2: memref<8x36xf32, #tpu.memory_space<vmem>>, %arg3: memref<8x2xf32, #tpu.memory_space<vmem>>, %arg4: memref<2x8x256xf32, #tpu.memory_space<vmem>>) attributes {dimension_semantics = [#tpu.dimension_semantics<arbitrary>], iteration_bounds = array<i64: 1>, scalar_prefetch = 0 : i64, scratch_operands = 0 : i64, tpu.core_type = #tpu.core_type<tc>, window_params = [{pipeline_mode = #tpu.pipeline_mode<synchronous>, transform_indices = @transform_0, window_bounds = array<i64: 2, 36, 256>}, {pipeline_mode = #tpu.pipeline_mode<synchronous>, transform_indices = @transform_1, window_bounds = array<i64: 8, 36>}, {pipeline_mode = #tpu.pipeline_mode<synchronous>, transform_indices = @transform_2, window_bounds = array<i64: 8, 2>}, {pipeline_mode = #tpu.pipeline_mode<synchronous>, transform_indices = @transform_3, window_bounds = array<i64: 2, 8, 256>}]} {
    %cst = arith.constant 0.000000e+00 : f32
    %0 = vector.broadcast %cst : f32 to vector<8x1xf32>
    %cst_0 = arith.constant 0.000000e+00 : f32
    %1 = vector.broadcast %cst_0 : f32 to vector<8x1xf32>
    %c0 = arith.constant 0 : index
    %c0_1 = arith.constant 0 : index
    %2 = vector.load %arg2[%c0, %c0_1] : memref<8x36xf32, #tpu.memory_space<vmem>>, vector<8x36xf32>
    %c0_2 = arith.constant 0 : index
    %c0_3 = arith.constant 0 : index
    %c0_4 = arith.constant 0 : index
    %3 = vector.load %arg1[%c0_2, %c0_3, %c0_4] : memref<2x36x256xf32, #tpu.memory_space<vmem>>, vector<1x36x256xf32>
    %4 = vector.shape_cast %3 : vector<1x36x256xf32> to vector<36x256xf32>
    %cst_5 = arith.constant dense<0.000000e+00> : vector<8x256xf32>
    %5 = tpu.matmul %2, %4, %cst_5 {dimension_numbers = #tpu.dot_dimension_numbers<[1], [0], [0], [1], [0, 0, 1, 1], [], []>} : vector<8x36xf32>, vector<36x256xf32>, vector<8x256xf32> -> vector<8x256xf32>
    %c0_6 = arith.constant 0 : index
    %c0_7 = arith.constant 0 : index
    %c0_8 = arith.constant 0 : index
    %6 = vector.load %arg4[%c0_6, %c0_7, %c0_8] : memref<2x8x256xf32, #tpu.memory_space<vmem>>, vector<1x8x256xf32>
    %7 = vector.shape_cast %6 : vector<1x8x256xf32> to vector<8x256xf32>
    %8 = vector.shape_cast %5 : vector<8x256xf32> to vector<1x8x256xf32>
    tpu.vector_store %arg4[%c0_6, %c0_7, %c0_8], %8 {strides = array<i32>} : memref<2x8x256xf32, #tpu.memory_space<vmem>>, vector<1x8x256xf32>,
    %cst_9 = arith.constant dense<0.000000e+00> : vector<8xf32>
    %9 = vector.multi_reduction <add>, %5, %cst_9 [1] : vector<8x256xf32> to vector<8xf32>
    %10 = vector.shape_cast %9 : vector<8xf32> to vector<8x1xf32>
    %11 = arith.addf %0, %10 : vector<8x1xf32>
    %12 = arith.mulf %5, %5 : vector<8x256xf32>
    %cst_10 = arith.constant dense<0.000000e+00> : vector<8xf32>
    %13 = vector.multi_reduction <add>, %12, %cst_10 [1] : vector<8x256xf32> to vector<8xf32>
    %14 = vector.shape_cast %13 : vector<8xf32> to vector<8x1xf32>
    %15 = arith.addf %1, %14 : vector<8x1xf32>
    %c0_11 = arith.constant 0 : index
    %c0_12 = arith.constant 0 : index
    %16 = vector.load %arg2[%c0_11, %c0_12] : memref<8x36xf32, #tpu.memory_space<vmem>>, vector<8x36xf32>
    %c1 = arith.constant 1 : index
    %c0_13 = arith.constant 0 : index
    %c0_14 = arith.constant 0 : index
    %17 = vector.load %arg1[%c1, %c0_13, %c0_14] : memref<2x36x256xf32, #tpu.memory_space<vmem>>, vector<1x36x256xf32>
    %18 = vector.shape_cast %17 : vector<1x36x256xf32> to vector<36x256xf32>
    %cst_15 = arith.constant dense<0.000000e+00> : vector<8x256xf32>
    %19 = tpu.matmul %16, %18, %cst_15 {dimension_numbers = #tpu.dot_dimension_numbers<[1], [0], [0], [1], [0, 0, 1, 1], [], []>} : vector<8x36xf32>, vector<36x256xf32>, vector<8x256xf32> -> vector<8x256xf32>
    %c1_16 = arith.constant 1 : index
    %c0_17 = arith.constant 0 : index
    %c0_18 = arith.constant 0 : index
    %20 = vector.load %arg4[%c1_16, %c0_17, %c0_18] : memref<2x8x256xf32, #tpu.memory_space<vmem>>, vector<1x8x256xf32>
    %21 = vector.shape_cast %20 : vector<1x8x256xf32> to vector<8x256xf32>
    %22 = vector.shape_cast %19 : vector<8x256xf32> to vector<1x8x256xf32>
    tpu.vector_store %arg4[%c1_16, %c0_17, %c0_18], %22 {strides = array<i32>} : memref<2x8x256xf32, #tpu.memory_space<vmem>>, vector<1x8x256xf32>,
    %cst_19 = arith.constant dense<0.000000e+00> : vector<8xf32>
    %23 = vector.multi_reduction <add>, %19, %cst_19 [1] : vector<8x256xf32> to vector<8xf32>
    %24 = vector.shape_cast %23 : vector<8xf32> to vector<8x1xf32>
    %25 = arith.addf %11, %24 : vector<8x1xf32>
    %26 = arith.mulf %19, %19 : vector<8x256xf32>
    %cst_20 = arith.constant dense<0.000000e+00> : vector<8xf32>
    %27 = vector.multi_reduction <add>, %26, %cst_20 [1] : vector<8x256xf32> to vector<8xf32>
    %28 = vector.shape_cast %27 : vector<8xf32> to vector<8x1xf32>
    %29 = arith.addf %15, %28 : vector<8x1xf32>
    %cst_21 = arith.constant 0.001953125 : f32
    %30 = vector.broadcast %cst_21 : f32 to vector<8x1xf32>
    %31 = arith.mulf %25, %30 : vector<8x1xf32>
    %cst_22 = arith.constant 0.001953125 : f32
    %32 = vector.broadcast %cst_22 : f32 to vector<8x1xf32>
    %33 = arith.mulf %29, %32 : vector<8x1xf32>
    %34 = arith.mulf %31, %31 : vector<8x1xf32>
    %35 = arith.subf %33, %34 : vector<8x1xf32>
    %cst_23 = arith.constant 0.000000e+00 : f32
    %36 = vector.broadcast %cst_23 : f32 to vector<8x1xf32>
    %37 = arith.maximumf %35, %36 : vector<8x1xf32>
    %c0_24 = arith.constant 0 : index
    %c0_25 = arith.constant 0 : index
    %38 = vector.load %arg3[%c0_24, %c0_25] : memref<8x2xf32, #tpu.memory_space<vmem>>, vector<8x1xf32>
    %cst_26 = arith.constant 9.99999974E-6 : f32
    %39 = vector.broadcast %cst_26 : f32 to vector<8x1xf32>
    %40 = arith.addf %37, %39 : vector<8x1xf32>
    %41 = math.rsqrt %40 : vector<8x1xf32>
    %42 = arith.mulf %38, %41 : vector<8x1xf32>
    %c0_27 = arith.constant 0 : index
    %c1_28 = arith.constant 1 : index
    %43 = vector.load %arg3[%c0_27, %c1_28] : memref<8x2xf32, #tpu.memory_space<vmem>>, vector<8x1xf32>
    %44 = arith.mulf %31, %42 : vector<8x1xf32>
    %45 = arith.subf %43, %44 : vector<8x1xf32>
    %c0_29 = arith.constant 0 : index
    %c0_30 = arith.constant 0 : index
    %c0_31 = arith.constant 0 : index
    %46 = vector.load %arg4[%c0_29, %c0_30, %c0_31] : memref<2x8x256xf32, #tpu.memory_space<vmem>>, vector<1x8x256xf32>
    %47 = vector.shape_cast %46 : vector<1x8x256xf32> to vector<8x256xf32>
    %48 = vector.broadcast %42 : vector<8x1xf32> to vector<8x256xf32>
    %49 = arith.mulf %47, %48 : vector<8x256xf32>
    %50 = vector.broadcast %45 : vector<8x1xf32> to vector<8x256xf32>
    %51 = arith.addf %49, %50 : vector<8x256xf32>
    %cst_32 = arith.constant 0.000000e+00 : f32
    %52 = vector.broadcast %cst_32 : f32 to vector<8x256xf32>
    %53 = arith.maximumf %51, %52 : vector<8x256xf32>
    %c0_33 = arith.constant 0 : index
    %c0_34 = arith.constant 0 : index
    %c0_35 = arith.constant 0 : index
    %54 = vector.load %arg4[%c0_33, %c0_34, %c0_35] : memref<2x8x256xf32, #tpu.memory_space<vmem>>, vector<1x8x256xf32>
    %55 = vector.shape_cast %54 : vector<1x8x256xf32> to vector<8x256xf32>
    %56 = vector.shape_cast %53 : vector<8x256xf32> to vector<1x8x256xf32>
    tpu.vector_store %arg4[%c0_33, %c0_34, %c0_35], %56 {strides = array<i32>} : memref<2x8x256xf32, #tpu.memory_space<vmem>>, vector<1x8x256xf32>,
    %c1_36 = arith.constant 1 : index
    %c0_37 = arith.constant 0 : index
    %c0_38 = arith.constant 0 : index
    %57 = vector.load %arg4[%c1_36, %c0_37, %c0_38] : memref<2x8x256xf32, #tpu.memory_space<vmem>>, vector<1x8x256xf32>
    %58 = vector.shape_cast %57 : vector<1x8x256xf32> to vector<8x256xf32>
    %59 = vector.broadcast %42 : vector<8x1xf32> to vector<8x256xf32>
    %60 = arith.mulf %58, %59 : vector<8x256xf32>
    %61 = vector.broadcast %45 : vector<8x1xf32> to vector<8x256xf32>
    %62 = arith.addf %60, %61 : vector<8x256xf32>
    %cst_39 = arith.constant 0.000000e+00 : f32
    %63 = vector.broadcast %cst_39 : f32 to vector<8x256xf32>
    %64 = arith.maximumf %62, %63 : vector<8x256xf32>
    %c1_40 = arith.constant 1 : index
    %c0_41 = arith.constant 0 : index
    %c0_42 = arith.constant 0 : index
    %65 = vector.load %arg4[%c1_40, %c0_41, %c0_42] : memref<2x8x256xf32, #tpu.memory_space<vmem>>, vector<1x8x256xf32>
    %66 = vector.shape_cast %65 : vector<1x8x256xf32> to vector<8x256xf32>
    %67 = vector.shape_cast %64 : vector<8x256xf32> to vector<1x8x256xf32>
    tpu.vector_store %arg4[%c1_40, %c0_41, %c0_42], %67 {strides = array<i32>} : memref<2x8x256xf32, #tpu.memory_space<vmem>>, vector<1x8x256xf32>,
    return
  }
  func.func @transform_0(%arg0: i32) -> (i32, i32, i32) {
    %c0_i32 = arith.constant 0 : i32
    %c0_i32_0 = arith.constant 0 : i32
    %c0_i32_1 = arith.constant 0 : i32
    %c0_i32_2 = arith.constant 0 : i32
    return %c0_i32, %c0_i32_0, %c0_i32_1 : i32, i32, i32
  }
  func.func @transform_1(%arg0: i32) -> (i32, i32) {
    %c0_i32 = arith.constant 0 : i32
    %c0_i32_0 = arith.constant 0 : i32
    %c0_i32_1 = arith.constant 0 : i32
    return %c0_i32, %c0_i32_0 : i32, i32
  }
  func.func @transform_2(%arg0: i32) -> (i32, i32) {
    %c0_i32 = arith.constant 0 : i32
    %c0_i32_0 = arith.constant 0 : i32
    %c0_i32_1 = arith.constant 0 : i32
    return %c0_i32, %c0_i32_0 : i32, i32
  }
  func.func @transform_3(%arg0: i32) -> (i32, i32, i32) {
    %c0_i32 = arith.constant 0 : i32
    %c0_i32_0 = arith.constant 0 : i32
    %c0_i32_1 = arith.constant 0 : i32
    %c0_i32_2 = arith.constant 0 : i32
    return %c0_i32, %c0_i32_0, %c0_i32_1 : i32, i32, i32
  }
}

</mosaic_0001>

<bundles_post_ra>
// kernel: tpu_custom_call.1
= control target key start
LH: loop header
LB: loop body
LE: loop exit
PB: predicated region body
PF: predicated region fallthrough
CT: control target
= control target key end

     0   :  { %vm30_vm0 = vcmask 1043456   ;;  %vm26_vm1 = vcmask 293888   ;;  %s384_s0 = inlined_call_operand.vmem [shape: f32[2,36,256], index: 0, kind: input, shape index: {}]   ;;  %s385_s1 = inlined_call_operand.vmem [shape: f32[8,36], index: 1, kind: input, shape index: {}]   ;;  %s386_s2 = inlined_call_operand.vmem [shape: f32[8,2], index: 2, kind: input, shape index: {}]   ;;  %s387_s3 = inlined_call_operand.hbm [shape: f32[2,8,256], index: 3, kind: output, shape index: {}]  }
   0x1   :  { %v24_v0 = vld [vmem:[%s384_s0 + $0x40] sm:$0xf]  ;;  %v25_v1 = vld [vmem:[%s384_s0 + $0x48] sm:$0xf]  ;;  %v22_v2 = vld [vmem:[%s384_s0 + $0x30] sm:$0xff] }
   0x2   :  { %235 = vmatpush.msk.msra.mxu0 %vm30_vm0, %v24_v0  ;;  %237 = vmatpush.msk.msra.mxu1 %vm30_vm0, %v25_v1  ;;  %v23_v3 = vld [vmem:[%s384_s0 + $0x38] sm:$0xff]  ;;  %v247_v4 = vld [vmem:[%s384_s0 + $0x90] sm:$0xf]  ;;  %v20_v6 = vld [vmem:[%s384_s0 + $0x20] sm:$0xff] }
   0x3   :  { %v248_v5 = vld [vmem:[%s384_s0 + $0x98] sm:$0xf]  ;;  %249 = vmatpush.msk.msra.mxu2 %vm30_vm0, %v247_v4  ;;  %v21_v7 = vld [vmem:[%s384_s0 + $0x28] sm:$0xff]  ;;  %v245_v8 = vld [vmem:[%s384_s0 + $0x80] sm:$0xff] }
   0x4   :  { %251 = vmatpush.msk.msra.mxu3 %vm30_vm0, %v248_v5  ;;  %49 = vmatpush.msra.mxu0 %v22_v2  ;;  %v246_v9 = vld [vmem:[%s384_s0 + $0x88] sm:$0xff]  ;;  %v18_v10 = vld [vmem:[%s384_s0 + $0x10] sm:$0xff]  ;;  %v19_v11 = vld [vmem:[%s384_s0 + $0x18] sm:$0xff] }
   0x5   :  { %69 = vmatpush.msra.mxu1 %v23_v3  ;;  %122 = vmatpush.msra.mxu2 %v245_v8  ;;  %v243_v12 = vld [vmem:[%s384_s0 + $0x70] sm:$0xff]  ;;  %v244_v13 = vld [vmem:[%s384_s0 + $0x78] sm:$0xff]  ;;  %v241_v14 = vld [vmem:[%s384_s0 + $0x60] sm:$0xff] }
   0x6   :  { %142 = vmatpush.msra.mxu3 %v246_v9  ;;  %50 = vmatpush.msra.mxu0 %v20_v6  ;;  %v242_v15 = vld [vmem:[%s384_s0 + $0x68] sm:$0xff]  ;;  %v16_v16 = vld [vmem:[%s384_s0] sm:$0xff] }
   0x7   :  { %70 = vmatpush.msra.mxu1 %v21_v7  ;;  %123 = vmatpush.msra.mxu2 %v243_v12  ;;  %v17_v17 = vld [vmem:[%s384_s0 + $0x8] sm:$0xff]  ;;  %v15_v18 = vld [vmem:[%s385_s1] sm:$0xff] }
   0x8   :  { %143 = vmatpush.msra.mxu3 %v244_v13  ;;  %51 = vmatpush.msra.mxu0 %v18_v10 }
   0x9   :  { %71 = vmatpush.msra.mxu1 %v19_v11 }
   0xa   :  { %8 = vsyncpa [#allocation3], 0  ;;  %124 = vmatpush.msra.mxu2 %v241_v14  ;;  %144 = vmatpush.msra.mxu3 %v242_v15  ;;  %v239_v19 = vld [vmem:[%s384_s0 + $0x50] sm:$0xff]  ;;  %v240_v20 = vld [vmem:[%s384_s0 + $0x58] sm:$0xff]  ;;  %v289_v40 = vmov 0   ;;  %s290_s27 = smov 1  }
   0xb   :  { %52 = vmatpush.msra.mxu0 %v16_v16  ;;  %72 = vmatpush.msra.mxu1 %v17_v17  ;;  %v168_v51 = vld [vmem:[%s386_s2] sm:$0xff]  ;;  %v291_v56 = vmov 1   ;;  %s292_s2 = smov [#allocation2]   ;;  %s223_s4 = sshll.u32 %s387_s3, 4  ;;  %s224_s4 = int_to_ptr.hbm [resolvable:$true] %s223_s4 }
   0xc   :  { %236 = vmatmul.msk.f32.vlgmr.msra.gmra.mxu0 %vm26_vm1, %v15_v18  ;;  %238 = vmatmul.msk.f32.vlgmr.msra.gmra.mxu1 %vm26_vm1, %v15_v18  ;;  %s221_s28 = sshll.u32 %s292_s2, 4  ;;  %s293_s5 = smov 256   ;;  %s222_s28 = int_to_ptr.vmem [resolvable:$true] %s221_s28 }
   0xd   :  { %125 = vmatpush.msra.mxu2 %v239_v19  ;;  %145 = vmatpush.msra.mxu3 %v240_v20  ;;  %s294_s6 = smov 16  }
   0xe   :  { %250 = vmatmul.msk.f32.vlgmr.msra.gmra.mxu2 %vm26_vm1, %v15_v18  ;;  %252 = vmatmul.msk.f32.vlgmr.msra.gmra.mxu3 %vm26_vm1, %v15_v18 }
   0xf   :  { %259 = vset.pattern.permute.xlu2 %v289_v40  ;;  %260 = vset.pattern.permute.xlu0 %v291_v56 }
  0x89   :  { %v54_v21 = vpop.f32.mrf.mxu0  ;;  %v74_v22 = vpop.f32.mrf.mxu1 }
  0x8a   :  { %v83_v23 = vmul.f32 %v54_v21, %v54_v21  ;;  %v84_v24 = vmul.f32 %v74_v22, %v74_v22  ;;  %v79_v25 = vadd.f32 %v74_v22, %v54_v21 }
  0x8c   :  { %80 = vadd.xlane.f32.xlu0 %v79_v25  ;;  %v85_v26 = vadd.f32 %v84_v24, %v83_v23 }
  0x8e   :  { %86 = vadd.xlane.f32.xlu1 %v85_v26 }
  0x91   :  { %v127_v27 = vpop.f32.mrf.mxu2  ;;  %v147_v28 = vpop.f32.mrf.mxu3 }
  0x92   :  { %v157_v29 = vmul.f32 %v127_v27, %v127_v27  ;;  %v158_v30 = vmul.f32 %v147_v28, %v147_v28  ;;  %v153_v31 = vadd.f32 %v147_v28, %v127_v27 }
  0x94   :  { %154 = vadd.xlane.f32.xlu0 %v153_v31  ;;  %v159_v32 = vadd.f32 %v158_v30, %v157_v29 }
  0x96   :  { %160 = vadd.xlane.f32.xlu1 %v159_v32 }
  0xff   :  { %v81_v33 = vpop.xlane.xlu0 %80 }
 0x101   :  { %v87_v34 = vpop.xlane.xlu1 %86 }
 0x107   :  { %v155_v35 = vpop.xlane.xlu0 %154 }
 0x108   :  { %v156_v36 = vadd.f32 %v155_v35, %v81_v33 }
 0x109   :  { %v161_v37 = vpop.xlane.xlu1 %160 }
 0x10a   :  { %v163_v38 = vmul.f32 0.001953125, %v156_v36  ;;  %v162_v39 = vadd.f32 %v161_v37, %v87_v34 }
 0x10c   :  { %v165_v41 = vmul.f32 %v163_v38, %v163_v38  ;;  %v164_v42 = vmul.f32 0.001953125, %v162_v39 }
 0x10e   :  { %v166_v43 = vsub.f32 %v164_v42, %v165_v41 }
 0x110   :  { %v167_v44 = vmax.f32 %v166_v43, 0.0 }
 0x112   :  { %v169_v45 = vadd.f32 1e-05, %v167_v44 }
 0x114   :  { %261 = vrsqrt.f32 %v169_v45  ;;  %vm176_vm3 = vweird.f32 %v169_v45 }
 0x11a   :  { %v262_v46 = vpop.eup %261 }
 0x11b   :  { %v171_v47 = vmul.f32 %v262_v46, %v169_v45  ;;  %vm177_vm2 = vweird.f32 %v262_v46 }
 0x11c   :  { %vm178_vm4 = vmor %vm176_vm3, %vm177_vm2 }
 0x11d   :  { %v172_v48 = vmul.f32 %v262_v46, %v171_v47 }
 0x11f   :  { %v173_v49 = vmul.f32 0.5, %v172_v48 }
 0x121   :  { %v174_v50 = vsub.f32 1.5, %v173_v49 }
 0x123   :  { %v175_v52 = vmul.f32 %v262_v46, %v174_v50 }
 0x125   :  { %v179_v53 = vsel %vm178_vm4, %v262_v46, %v175_v52 }
 0x126   :  { %v180_v54 = vmul.f32 %v179_v53, %v168_v51 }
 0x128   :  { %v181_v55 = vmul.f32 %v180_v54, %v163_v38 }
 0x12a   :  { %183 = vrot.lane.b32.xlu2 %v181_v55, %s290_s27 }
 0x132   :  { %191 = vperm.xlu2 %259, %v180_v54  }
 0x184   :  { %v184_v57 = vpop.permute.xlu2 %183 }
 0x185   :  { %v186_v58 = vsub.f32 %v168_v51, %v184_v57 }
 0x187   :  { %198 = vperm.xlu0 %260, %v186_v58  }
 0x18c   :  { %v192_v59 = vpop.permute.xlu2 %191 }
 0x18d   :  { %v194_v60 = vmul.f32 %v192_v59, %v54_v21  ;;  %v195_v61 = vmul.f32 %v192_v59, %v74_v22  ;;  %v209_v62 = vmul.f32 %v192_v59, %v127_v27  ;;  %v210_v63 = vmul.f32 %v192_v59, %v147_v28 }
 0x1f9   :  { %v199_v0 = vpop.permute.xlu0 %198 }
 0x1fa   :  { %v201_v1 = vadd.f32 %v199_v0, %v194_v60  ;;  %v202_v2 = vadd.f32 %v199_v0, %v195_v61  ;;  %v211_v3 = vadd.f32 %v209_v62, %v199_v0  ;;  %v212_v4 = vadd.f32 %v210_v63, %v199_v0 }
 0x1fc   :  { %v203_v5 = vmax.f32 %v201_v1, 0.0  ;;  %v204_v6 = vmax.f32 %v202_v2, 0.0  ;;  %v213_v7 = vmax.f32 %v211_v3, 0.0  ;;  %v214_v8 = vmax.f32 %v212_v4, 0.0 }
 0x1fe   :  { %205 = vst [vmem:[#allocation2] sm:$0xff] %v203_v5 }
 0x1ff   :  { %206 = vst [vmem:[#allocation2 + $0x8] sm:$0xff] %v204_v6 }
 0x200   :  { %215 = vst [vmem:[#allocation2 + $0x10] sm:$0xff] %v213_v7 }
 0x201   :  { %216 = vst [vmem:[#allocation2 + $0x18] sm:$0xff] %v214_v8 }
 0x202   :  { %229 = dma.vmem_to_hbm [thread:$0]  %s222_s28, 512, %s224_s4, [#allocation3], %s293_s5, %s293_s5, %s294_s6  }
 0x203   :  { %287 = dma.done.wait [#allocation3], 512  }
 0x204   :  { %288 = vsyncadd [#allocation3], 4294966784 }
 0x205   :  { %234 = vsyncpa [#allocation3], 1 }

</bundles_post_ra>
